<compile_context>
chip_gen: v7x
topology: tpu7x:2x2x1
jax: 0.10.0
libtpu: 0.0.40
codegen_flags: <defaults>
</compile_context>

<pallas_src>
import functools

import jax
import jax.numpy as jnp
from jax import lax
from jax.experimental import pallas as pl
from jax.experimental.pallas import tpu as pltpu


def _round_up(x, m):
    return (x + m - 1) // m * m


def _instance_norm_kernel(x_ref, gamma_ref, beta_ref, o_ref, *, eps, hw, hw_pad):
    # x_ref: (row_tile, hw_pad); gamma_ref / beta_ref: (row_tile, 1)
    x = x_ref[...].astype(jnp.float32)

    # Padded lanes (if any) are zero, so a plain row-sum is already the sum
    # over the valid HW columns.
    s = jnp.sum(x, axis=-1, keepdims=True)
    mean = s * (1.0 / hw)

    centered = x - mean
    if hw_pad != hw:
        # Keep padded lanes out of the variance.
        col = lax.broadcasted_iota(jnp.int32, x.shape, 1)
        centered = jnp.where(col < hw, centered, 0.0)

    # torch.var default: unbiased (divide by HW - 1), matching the module.
    # (max(.,1) guards the degenerate HW==1 edge case.)
    var = jnp.sum(centered * centered, axis=-1, keepdims=True) * (
        1.0 / max(hw - 1.0, 1.0)
    )
    inv_std = lax.rsqrt(var + eps)

    # Fold normalize + affine into a single FMA: out = x * a + b.
    a = inv_std * gamma_ref[...].astype(jnp.float32)
    b = beta_ref[...].astype(jnp.float32) - mean * a
    o_ref[...] = (x * a + b).astype(o_ref.dtype)


def instance_norm(x, gamma, beta, eps=1e-3):
    """x: (N, C, H, W); gamma, beta: (1, C, 1, 1)."""
    N, C, H, W = x.shape
    HW = H * W
    rows = N * C

    # ---- layout: one (sample, channel) instance per row, lane-dense HW ----
    HW_pad = _round_up(HW, 128)
    x2d = x.reshape(rows, HW)

    gamma_rows = jnp.broadcast_to(gamma.reshape(1, C), (N, C)).reshape(rows, 1)
    beta_rows = jnp.broadcast_to(beta.reshape(1, C), (N, C)).reshape(rows, 1)
    gamma_rows = gamma_rows.astype(jnp.float32)
    beta_rows = beta_rows.astype(jnp.float32)

    # ---- tile sizing (generation-safe VMEM budget) ----
    sublane = 8 if x.dtype.itemsize >= 4 else 16  # bf16 packs 16 rows / vreg
    bytes_per_row = HW_pad * 4  # budget conservatively as f32
    # ~4 MiB per x block => in + out, double-buffered, stays ~16-17 MiB
    # resident: inside v7x's 64 MiB physical VMEM and the raised scoped limit.
    target_block_bytes = 4 * 1024 * 1024
    row_tile = max(
        sublane, (target_block_bytes // bytes_per_row) // sublane * sublane
    )
    # TODO(synk): for very large spatial sizes (HW_pad * 4 B * sublane rows
    # exceeding the block budget, e.g. 1024x1024 images) add a second
    # "arbitrary" grid axis over HW with a sum/sum-of-squares accumulator
    # (pl.when init/finalize) instead of one full-row block.

    rows_sub = _round_up(rows, sublane)
    if row_tile >= rows_sub:
        # Whole problem fits in one block; still expose >= 2 grid steps when
        # possible so v7x's two TensorCores both get work.
        if rows_sub >= 2 * sublane:
            row_tile = _round_up(rows_sub // 2, sublane)
        else:
            row_tile = rows_sub
    rows_pad = _round_up(rows, row_tile)
    grid = (rows_pad // row_tile,)

    # ---- pad to tile boundaries (zero padding keeps padded rows finite) ----
    if rows_pad != rows or HW_pad != HW:
        x2d = jnp.pad(x2d, ((0, rows_pad - rows), (0, HW_pad - HW)))
    if rows_pad != rows:
        gamma_rows = jnp.pad(gamma_rows, ((0, rows_pad - rows), (0, 0)))
        beta_rows = jnp.pad(beta_rows, ((0, rows_pad - rows), (0, 0)))

    kernel = functools.partial(
        _instance_norm_kernel, eps=float(eps), hw=HW, hw_pad=HW_pad
    )

    out2d = pl.pallas_call(
        kernel,
        out_shape=jax.ShapeDtypeStruct((rows_pad, HW_pad), x.dtype),
        grid_spec=pltpu.PrefetchScalarGridSpec(
            num_scalar_prefetch=0,
            grid=grid,
            in_specs=[
                pl.BlockSpec((row_tile, HW_pad), lambda i: (i, 0)),
                pl.BlockSpec((row_tile, 1), lambda i: (i, 0)),
                pl.BlockSpec((row_tile, 1), lambda i: (i, 0)),
            ],
            out_specs=pl.BlockSpec((row_tile, HW_pad), lambda i: (i, 0)),
        ),
        compiler_params=pltpu.CompilerParams(
            dimension_semantics=("parallel",),
            # Raise the scoped VMEM limit (defaults: 16 MiB v5e, 32 MiB
            # v6e/v7x) so larger blocks keep double-buffering; 48 MiB is
            # still inside v7x's 64 MiB physical VMEM.
            vmem_limit_bytes=48 * 1024 * 1024,
        ),
    )(x2d, gamma_rows, beta_rows)

    out2d = out2d[:rows, :HW]
    return out2d.reshape(N, C, H, W)


def instance_norm_ref(x, gamma, beta, eps=1e-3):
    mean = jnp.mean(x, axis=(2, 3), keepdims=True)
    # torch.var default is unbiased (ddof=1), matching the reference module.
    var = jnp.var(x, axis=(2, 3), keepdims=True, ddof=1)
    xnorm = (x - mean) / jnp.sqrt(var + eps)
    return xnorm * gamma + beta


if __name__ == "__main__":
    key = jax.random.PRNGKey(0)
    N, C, H, W = 2, 4, 16, 16  # small shapes; num_channels = 4

    x = jax.random.normal(key, (N, C, H, W), dtype=jnp.float32)
    # Deterministic parameter init matching the torch module:
    #   gamma = ones(1, C, 1, 1), beta = zeros(1, C, 1, 1), eps = 0.001
    gamma = jnp.ones((1, C, 1, 1), dtype=jnp.float32)
    beta = jnp.zeros((1, C, 1, 1), dtype=jnp.float32)
    eps = 1e-3

    out = instance_norm(x, gamma, beta, eps)
    out = jax.block_until_ready(out)

    ref = instance_norm_ref(x, gamma, beta, eps)
    assert out.shape == (N, C, H, W)
    assert jnp.allclose(out, ref, atol=1e-5, rtol=1e-5)

    print("KERNEL_OK")
</pallas_src>

<mosaic_0001>
module attributes {stable_mosaic.version = 11 : i64} {
  func.func @_instance_norm_kernel(%arg0: i32, %arg1: memref<8x256xf32, #tpu.memory_space<vmem>>, %arg2: memref<8x1xf32, #tpu.memory_space<vmem>>, %arg3: memref<8x1xf32, #tpu.memory_space<vmem>>, %arg4: memref<8x256xf32, #tpu.memory_space<vmem>>) attributes {dimension_semantics = [#tpu.dimension_semantics<parallel>], iteration_bounds = array<i64: 1>, scalar_prefetch = 0 : i64, scratch_operands = 0 : i64, tpu.core_type = #tpu.core_type<tc>, window_params = [{transform_indices = @transform_0, window_bounds = array<i64: 8, 256>}, {transform_indices = @transform_1, window_bounds = array<i64: 8, 1>}, {transform_indices = @transform_2, window_bounds = array<i64: 8, 1>}, {transform_indices = @transform_3, window_bounds = array<i64: 8, 256>}]} {
    %c0 = arith.constant 0 : index
    %c0_0 = arith.constant 0 : index
    %0 = vector.load %arg1[%c0, %c0_0] : memref<8x256xf32, #tpu.memory_space<vmem>>, vector<8x256xf32>
    %cst = arith.constant dense<0.000000e+00> : vector<8xf32>
    %1 = vector.multi_reduction <add>, %0, %cst [1] : vector<8x256xf32> to vector<8xf32>
    %2 = vector.shape_cast %1 : vector<8xf32> to vector<8x1xf32>
    %cst_1 = arith.constant 3.906250e-03 : f32
    %3 = vector.broadcast %cst_1 : f32 to vector<8x1xf32>
    %4 = arith.mulf %2, %3 : vector<8x1xf32>
    %5 = vector.broadcast %4 : vector<8x1xf32> to vector<8x256xf32>
    %6 = arith.subf %0, %5 : vector<8x256xf32>
    %7 = arith.mulf %6, %6 : vector<8x256xf32>
    %cst_2 = arith.constant dense<0.000000e+00> : vector<8xf32>
    %8 = vector.multi_reduction <add>, %7, %cst_2 [1] : vector<8x256xf32> to vector<8xf32>
    %9 = vector.shape_cast %8 : vector<8xf32> to vector<8x1xf32>
    %cst_3 = arith.constant 0.00392156886 : f32
    %10 = vector.broadcast %cst_3 : f32 to vector<8x1xf32>
    %11 = arith.mulf %9, %10 : vector<8x1xf32>
    %cst_4 = arith.constant 1.000000e-03 : f32
    %12 = vector.broadcast %cst_4 : f32 to vector<8x1xf32>
    %13 = arith.addf %11, %12 : vector<8x1xf32>
    %14 = math.rsqrt %13 : vector<8x1xf32>
    %c0_5 = arith.constant 0 : index
    %c0_6 = arith.constant 0 : index
    %15 = vector.load %arg2[%c0_5, %c0_6] : memref<8x1xf32, #tpu.memory_space<vmem>>, vector<8x1xf32>
    %16 = arith.mulf %14, %15 : vector<8x1xf32>
    %c0_7 = arith.constant 0 : index
    %c0_8 = arith.constant 0 : index
    %17 = vector.load %arg3[%c0_7, %c0_8] : memref<8x1xf32, #tpu.memory_space<vmem>>, vector<8x1xf32>
    %18 = arith.mulf %4, %16 : vector<8x1xf32>
    %19 = arith.subf %17, %18 : vector<8x1xf32>
    %20 = vector.broadcast %16 : vector<8x1xf32> to vector<8x256xf32>
    %21 = arith.mulf %0, %20 : vector<8x256xf32>
    %22 = vector.broadcast %19 : vector<8x1xf32> to vector<8x256xf32>
    %23 = arith.addf %21, %22 : vector<8x256xf32>
    %c0_9 = arith.constant 0 : index
    %c0_10 = arith.constant 0 : index
    %24 = vector.load %arg4[%c0_9, %c0_10] : memref<8x256xf32, #tpu.memory_space<vmem>>, vector<8x256xf32>
    tpu.vector_store %arg4[%c0_9, %c0_10], %23 {strides = array<i32>} : memref<8x256xf32, #tpu.memory_space<vmem>>, vector<8x256xf32>,
    return
  }
  func.func @transform_0(%arg0: i32) -> (i32, i32) {
    %c0_i32 = arith.constant 0 : i32
    %c0_i32_0 = arith.constant 0 : i32
    return %arg0, %c0_i32 : i32, i32
  }
  func.func @transform_1(%arg0: i32) -> (i32, i32) {
    %c0_i32 = arith.constant 0 : i32
    %c0_i32_0 = arith.constant 0 : i32
    return %arg0, %c0_i32 : i32, i32
  }
  func.func @transform_2(%arg0: i32) -> (i32, i32) {
    %c0_i32 = arith.constant 0 : i32
    %c0_i32_0 = arith.constant 0 : i32
    return %arg0, %c0_i32 : i32, i32
  }
  func.func @transform_3(%arg0: i32) -> (i32, i32) {
    %c0_i32 = arith.constant 0 : i32
    %c0_i32_0 = arith.constant 0 : i32
    return %arg0, %c0_i32 : i32, i32
  }
}

</mosaic_0001>

<bundles_post_ra>
// kernel: tpu_custom_call.1
= control target key start
LH: loop header
LB: loop body
LE: loop exit
PB: predicated region body
PF: predicated region fallthrough
CT: control target
= control target key end

     0   :  { %s142_s0 = inlined_call_operand.vmem [shape: f32[8,256], index: 0, kind: input, shape index: {}]   ;;  %s143_s1 = inlined_call_operand.vmem [shape: f32[8,1], index: 1, kind: input, shape index: {}]   ;;  %s144_s2 = inlined_call_operand.vmem [shape: f32[8,1], index: 2, kind: input, shape index: {}]   ;;  %s145_s3 = inlined_call_operand.hbm [shape: f32[8,256], index: 3, kind: output, shape index: {}]  }
   0x1   :  { %v15_v0 = vld [vmem:[%s142_s0] sm:$0xff]  ;;  %v16_v1 = vld [vmem:[%s142_s0 + $0x8] sm:$0xff] }
   0x2   :  { %8 = vsyncpa [#allocation3], 0  ;;  %v17_v2 = vadd.f32 %v16_v1, %v15_v0  ;;  %v96_v10 = vmov 0   ;;  %v31_v14 = vld [vmem:[%s143_s1] sm:$0xff]  ;;  %s97_s19 = smov [#allocation2]  }
   0x3   :  { %68 = vset.pattern.permute.xlu1 %v96_v10  ;;  %69 = vset.pattern.permute.xlu0 %v96_v10  ;;  %v33_v17 = vld [vmem:[%s144_s2] sm:$0xff]  ;;  %s58_s20 = sshll.u32 %s97_s19, 4  ;;  %s59_s20 = int_to_ptr.vmem [resolvable:$true] %s58_s20 }
   0x4   :  { %18 = vadd.xlane.f32.xlu0 %v17_v2  ;;  %s72_s1 = scalar_lea.vmem %s59_s20, 256  ;;  %p77_p1 = scmp.lt.s32.totalorder %s59_s20, %s59_s20 }
   0x5   :  { %p73_p0 = scmp.ne.s32.totalorder %s59_s20, %s72_s1  ;;  %p78_p2 = scmp.lt.s32.totalorder %s72_s1, %s72_s1 }
   0x7   :  { %p79_p3 = por %p78_p2, %p77_p1 }
   0x9   :  { %p80_p4 = pnand %p79_p3, %p73_p0 }
  0x91   :  { %v19_v3 = vpop.xlane.xlu0 %18 }
  0x92   :  { %v20_v4 = vmul.f32 0.00390625, %v19_v3 }
  0x94   :  { %v21_v5 = vsub.f32 %v15_v0, %v20_v4  ;;  %v22_v6 = vsub.f32 %v16_v1, %v20_v4 }
  0x96   :  { %v23_v7 = vmul.f32 %v21_v5, %v21_v5  ;;  %v24_v8 = vmul.f32 %v22_v6, %v22_v6 }
  0x98   :  { %v25_v9 = vadd.f32 %v24_v8, %v23_v7 }
  0x9a   :  { %26 = vadd.xlane.f32.xlu0 %v25_v9 }
 0x127   :  { %v27_v11 = vpop.xlane.xlu0 %26 }
 0x128   :  { %v28_v12 = vmul.f32 0.003921569, %v27_v11 }
 0x12a   :  { %v29_v13 = vadd.f32 0.001, %v28_v12 }
 0x12c   :  { %70 = vrsqrt.f32 %v29_v13 }
 0x136   :  { %v71_v15 = vpop.eup %70 }
 0x137   :  { %v32_v16 = vmul.f32 %v71_v15, %v31_v14 }
 0x139   :  { %38 = vperm.xlu1 %68, %v32_v16   ;;  %v34_v18 = vmul.f32 %v32_v16, %v20_v4 }
 0x13b   :  { %v35_v19 = vsub.f32 %v33_v17, %v34_v18 }
 0x13d   :  { %45 = vperm.xlu1 %68, %v35_v19  }
 0x1b8   :  { %v39_v20 = vpop.permute.xlu1 %38 }
 0x1b9   :  { %v41_v21 = vmul.f32 %v39_v20, %v15_v0  ;;  %v42_v22 = vmul.f32 %v39_v20, %v16_v1 }
 0x1bc   :  { %v46_v23 = vpop.permute.xlu1 %45 }
 0x1bd   :  { %v48_v24 = vadd.f32 %v46_v23, %v41_v21  ;;  %v49_v25 = vadd.f32 %v46_v23, %v42_v22 }
 0x1bf   :  { %50 = vst [vmem:[#allocation2] sm:$0xff] %v48_v24  ;;  %51 = vst [vmem:[#allocation2 + $0x8] sm:$0xff] %v49_v25 }
 0x1c0   :  { %83 = shalt.err (!%p80_p4)
}
 0x1c1   :  { %s84_s22 = scalar_lea.hbm %s145_s3, 256 }
 0x1c2   :  { %p85_p5 = scmp.ne.s32.totalorder %s145_s3, %s84_s22  ;;  %p88_p6 = scmp.lt.u32.totalorder %s84_s22, %s145_s3 }
 0x1c4   :  { %p90_p7 = pnand %p88_p6, %p85_p5 }
 0x1c6   :  { %93 = shalt.err (!%p90_p7)
}
 0x1c7   :  { %61 = dma.vmem_to_hbm [thread:$0]  %s59_s20, 256, %s145_s3, [#allocation3]  }
 0x1c8   :  { %94 = dma.done.wait [#allocation3], 256  }
 0x1c9   :  { %95 = vsyncadd [#allocation3], 4294967040 }
 0x1ca   :  { %65 = vsyncpa [#allocation3], 1 }

</bundles_post_ra>
